<compile_context>
chip_gen: v7x
topology: tpu7x:2x2x1
jax: 0.10.0
libtpu: 0.0.40
codegen_flags: <defaults>
</compile_context>

<pallas_src>
import numpy as np
import jax
import jax.numpy as jnp
from jax.experimental import pallas as pl
from jax.experimental.pallas import tpu as pltpu


def calc_coeff(iter_num, max_iter, num_epochs):
    p = float(iter_num + max_iter) / num_epochs / (max_iter / num_epochs)
    alpha = 2.0 / (1.0 + np.exp(-10 * p)) - 1
    return alpha


def _round_up(x, m):
    return ((x + m - 1) // m) * m


# --------------------------------------------------------------------------
# Kernel
# --------------------------------------------------------------------------
def _domain_classifier_kernel(x_ref, w1_ref, b1_ref, w3_ref, o_ref, acc_ref):
    # x:  (tb, H_pad)   activations, resident across nj (index map const in nj)
    # w1: (H_pad, tn)   fc1 weight tile, pre-transposed (in, out)
    # b1: (1, H_pad)    fc1 bias, fully resident; sliced per nj step
    # w3: (1, H_pad)    fc3 weight row, fully resident; sliced per nj step
    # o:  (tb, 128)     lane-dense output slab (column 0 holds the result)
    # acc:(tb, 128) f32 running 128-lane partial sums of the fc3 reduction
    nj = pl.program_id(1)
    tn = w1_ref.shape[1]

    @pl.when(nj == 0)
    def _():
        acc_ref[...] = jnp.zeros_like(acc_ref)

    col0 = pl.multiple_of(nj * tn, 128)
    b1_tile = b1_ref[:, pl.ds(col0, tn)]          # (1, tn) f32
    w3_tile = w3_ref[:, pl.ds(col0, tn)]          # (1, tn) f32

    # fc1 tile on the MXU: (tb, H_pad) @ (H_pad, tn) -> (tb, tn), f32 accum.
    h = jnp.dot(x_ref[...], w1_ref[...], preferred_element_type=jnp.float32)
    h = jnp.maximum(h + b1_tile, 0.0)             # bias + relu

    # fc3 tile contribution: VPU multiply; accumulate 128-lane partial sums
    # (full lane reduction deferred to the final step -> one XLU pass total).
    hw = h * w3_tile                              # (tb, tn) f32
    partial = hw[:, 0:128]
    for c in range(1, tn // 128):                 # static, tn/128 in {1,2,4}
        partial = partial + hw[:, c * 128:(c + 1) * 128]
    acc_ref[...] += partial

    @pl.when(nj == pl.num_programs(1) - 1)
    def _():
        s = jnp.sum(acc_ref[...], axis=-1, keepdims=True)          # (tb, 1)
        o_ref[...] = jnp.broadcast_to(s, o_ref.shape).astype(o_ref.dtype)


# --------------------------------------------------------------------------
# One-time parameter preparation (pad + cast once; cache the result)
# --------------------------------------------------------------------------
def prepare_params(w1_t, b1, w3_t, b3, weight_dtype=jnp.bfloat16):
    """w1_t: (H, H) pre-transposed (in, out), b1: (H,), w3_t: (H, 1), b3: (1,).
       Pads H to a multiple of 128 and casts W1 to weight_dtype, once."""
    H = w1_t.shape[0]
    H_pad = _round_up(H, 128)
    f32 = jnp.float32
    if H_pad == H:
        w1_p = w1_t.astype(weight_dtype)
        b1_p = jnp.reshape(b1.astype(f32), (1, H_pad))
        w3_p = jnp.reshape(w3_t.astype(f32), (1, H_pad))
    else:
        w1_p = jnp.zeros((H_pad, H_pad), weight_dtype).at[:H, :H].set(
            w1_t.astype(weight_dtype))
        b1_p = jnp.zeros((1, H_pad), f32).at[0, :H].set(b1.astype(f32))
        w3_p = jnp.zeros((1, H_pad), f32).at[0, :H].set(
            jnp.reshape(w3_t, (-1,)).astype(f32))
    b3_p = jnp.reshape(b3, (1, 1)).astype(f32)
    return {"w1": w1_p, "b1": b1_p, "w3": w3_p, "b3": b3_p, "H": H}


# --------------------------------------------------------------------------
# Forward wrapper
# --------------------------------------------------------------------------
def domain_classifier_forward(x, params, max_iter, iter_num=0, num_epochs=10):
    """x: (B, H) float. params: output of prepare_params. Returns (B, 1) f32."""
    w1_p, b1_p, w3_p, b3_p = params["w1"], params["b1"], params["w3"], params["b3"]
    H = params["H"]
    H_pad = w1_p.shape[0]
    B = x.shape[0]
    f32 = jnp.float32

    # Gradient-reversal coefficient: forward of ReverseLayerF is the identity,
    # coeff only scales gradients, so it is unused here.
    _coeff = calc_coeff(iter_num, max_iter, num_epochs)  # noqa: F841

    w_itemsize = jnp.dtype(w1_p.dtype).itemsize
    act_dtype = w1_p.dtype if w_itemsize < 4 else f32     # cast x once, not per nj
    act_itemsize = jnp.dtype(act_dtype).itemsize
    sub = max(8, 32 // act_itemsize)                       # sublane multiple

    # ---- VMEM-budget-driven tiling (v7x: 64 MiB physical / 32 MiB scoped) ---
    VMEM_BUDGET = 28 << 20
    b8 = _round_up(B, sub)
    tb_cap = 512                                           # single batch tile for B<=512
    while tb_cap > sub and 2 * tb_cap * H_pad * act_itemsize > VMEM_BUDGET // 2:
        tb_cap //= 2
    n_bt = -(-b8 // tb_cap)                                # number of batch tiles
    tb = _round_up(-(-b8 // n_bt), sub)
    B_pad = n_bt * tb

    x_vmem = 2 * tb * H_pad * act_itemsize
    rem = max(VMEM_BUDGET - x_vmem, 2 * H_pad * 128 * w_itemsize)
    tn = 128
    for cand in (512, 256):
        if H_pad % cand == 0 and 2 * H_pad * cand * w_itemsize <= rem:
            tn = cand
            break

    vmem_need = (2 * H_pad * tn * w_itemsize       # W1 double-buffer
                 + x_vmem                          # x
                 + 4 * H_pad * 4                   # b1 + w3 resident rows
                 + 2 * tb * 128 * 4                # output double-buffer
                 + tb * 128 * 4)                   # accumulator scratch
    vmem_limit = int(min(max(vmem_need + (2 << 20), 16 << 20), 40 << 20))

    # ---- x: pad / cast only if needed ---------------------------------------
    if B_pad == B and H_pad == H and x.dtype == act_dtype:
        x_p = x
    else:
        x_p = jnp.zeros((B_pad, H_pad), act_dtype).at[:B, :H].set(
            x.astype(act_dtype))

    grid = (B_pad // tb, H_pad // tn)

    cost = pl.CostEstimate(
        flops=2 * B_pad * H_pad * H_pad + 4 * B_pad * H_pad,
        transcendentals=0,
        bytes_accessed=(x_p.size * act_itemsize + w1_p.size * w_itemsize
                        + b1_p.size * 4 + w3_p.size * 4 + B_pad * 128 * 4),
    )

    out = pl.pallas_call(
        _domain_classifier_kernel,
        out_shape=jax.ShapeDtypeStruct((B_pad, 128), f32),
        grid_spec=pltpu.PrefetchScalarGridSpec(
            num_scalar_prefetch=0,
            grid=grid,
            in_specs=[
                pl.BlockSpec((tb, H_pad), lambda bi, nj: (bi, 0)),   # x (resident over nj)
                pl.BlockSpec((H_pad, tn), lambda bi, nj: (0, nj)),   # W1 tile
                pl.BlockSpec((1, H_pad), lambda bi, nj: (0, 0)),     # b1 (fully resident)
                pl.BlockSpec((1, H_pad), lambda bi, nj: (0, 0)),     # w3 (fully resident)
            ],
            out_specs=pl.BlockSpec((tb, 128), lambda bi, nj: (bi, 0)),
            scratch_shapes=[pltpu.VMEM((tb, 128), f32)],
        ),
        compiler_params=pltpu.CompilerParams(
            dimension_semantics=("parallel", "arbitrary"),
            vmem_limit_bytes=vmem_limit),
        cost_estimate=cost,
    )(x_p, w1_p, b1_p, w3_p)

    # Column 0 is the fc3 dot product; fold in the fc3 bias here so the kernel
    # store stays lane-dense and unmasked.
    return out[:B, :1] + b3_p


# --------------------------------------------------------------------------
# Synthetic parameters (PyTorch nn.Linear shapes, pre-transposed to (in, out))
# --------------------------------------------------------------------------
def init_params(key, sent_hidden_size):
    H = sent_hidden_size
    k1, k2, k3, k4 = jax.random.split(key, 4)
    bound1 = 1.0 / np.sqrt(H)
    fc1_w = jax.random.uniform(k1, (H, H), jnp.float32, -bound1, bound1)
    fc1_b = jax.random.uniform(k2, (H,), jnp.float32, -bound1, bound1)
    fc3_w = jax.random.uniform(k3, (1, H), jnp.float32, -bound1, bound1)
    fc3_b = jax.random.uniform(k4, (1,), jnp.float32, -bound1, bound1)
    return fc1_w.T, fc1_b, fc3_w.T, fc3_b   # (in, out), (H,), (H, 1), (1,)


if __name__ == "__main__":
    sent_hidden_size = 32
    batch = 8
    max_iter = 100

    key = jax.random.PRNGKey(0)
    kx, kp = jax.random.split(key)
    x = jax.random.normal(kx, (batch, sent_hidden_size), dtype=jnp.float32)
    w1_t, b1, w3_t, b3 = init_params(kp, sent_hidden_size)

    # Pure-JAX reference: fc3(relu(fc1(x)))  (ReverseLayerF forward = identity)
    ref = jnp.maximum(x @ w1_t + b1[None, :], 0.0) @ w3_t + b3[None, :]

    # f32 weights: bit-tight check of the kernel math.
    params_f32 = prepare_params(w1_t, b1, w3_t, b3, weight_dtype=jnp.float32)
    out_f32 = jax.block_until_ready(
        domain_classifier_forward(x, params_f32, max_iter=max_iter))
    assert out_f32.shape == (batch, 1)
    np.testing.assert_allclose(np.asarray(out_f32), np.asarray(ref),
                               rtol=1e-5, atol=1e-5)

    # bf16 weights (default): halves W1 HBM traffic; f32 accumulation, so only
    # the per-element rounding shows up -> loose tolerance.
    params_bf16 = prepare_params(w1_t, b1, w3_t, b3)
    out_bf16 = jax.block_until_ready(
        domain_classifier_forward(x, params_bf16, max_iter=max_iter))
    assert out_bf16.shape == (batch, 1)
    np.testing.assert_allclose(np.asarray(out_bf16), np.asarray(ref),
                               rtol=5e-2, atol=5e-2)

    print("KERNEL_OK")
</pallas_src>

<mosaic_0001>
module attributes {stable_mosaic.version = 11 : i64} {
  func.func @_domain_classifier_kernel(%arg0: i32, %arg1: i32, %arg2: memref<8x128xf32, #tpu.memory_space<vmem>>, %arg3: memref<128x128xf32, #tpu.memory_space<vmem>>, %arg4: memref<1x128xf32, #tpu.memory_space<vmem>>, %arg5: memref<1x128xf32, #tpu.memory_space<vmem>>, %arg6: memref<8x128xf32, #tpu.memory_space<vmem>>, %arg7: memref<8x128xf32, #tpu.memory_space<vmem>>) attributes {dimension_semantics = [#tpu.dimension_semantics<parallel>, #tpu.dimension_semantics<arbitrary>], iteration_bounds = array<i64: 1, 1>, scalar_prefetch = 0 : i64, scratch_operands = 1 : i64, tpu.core_type = #tpu.core_type<tc>, window_params = [{transform_indices = @transform_0, window_bounds = array<i64: 8, 128>}, {transform_indices = @transform_1, window_bounds = array<i64: 128, 128>}, {pipeline_mode = #tpu.pipeline_mode<synchronous>, transform_indices = @transform_2, window_bounds = array<i64: 1, 128>}, {pipeline_mode = #tpu.pipeline_mode<synchronous>, transform_indices = @transform_3, window_bounds = array<i64: 1, 128>}, {transform_indices = @transform_4, window_bounds = array<i64: 8, 128>}]} {
    %c0_i32 = arith.constant 0 : i32
    %0 = arith.cmpi eq, %arg1, %c0_i32 : i32
    %1 = arith.extui %0 : i1 to i32
    %c0_i32_0 = arith.constant 0 : i32
    %2 = arith.cmpi ne, %1, %c0_i32_0 : i32
    scf.if %2 {
      %cst_13 = arith.constant 0.000000e+00 : f32
      %24 = vector.broadcast %cst_13 : f32 to vector<8x128xf32>
      %c0_14 = arith.constant 0 : index
      %c0_15 = arith.constant 0 : index
      %25 = vector.load %arg7[%c0_14, %c0_15] : memref<8x128xf32, #tpu.memory_space<vmem>>, vector<8x128xf32>
      tpu.vector_store %arg7[%c0_14, %c0_15], %24 {strides = array<i32>} : memref<8x128xf32, #tpu.memory_space<vmem>>, vector<8x128xf32>,
    } else {
    }
    %c128_i32 = arith.constant 128 : i32
    %3 = arith.muli %arg1, %c128_i32 : i32
    %4 = tpu.assume_multiple %3, 128 : i32
    %c0 = arith.constant 0 : index
    %5 = arith.index_cast %4 : i32 to index
    %6 = vector.load %arg4[%c0, %5] : memref<1x128xf32, #tpu.memory_space<vmem>>, vector<1x128xf32>
    %c0_1 = arith.constant 0 : index
    %7 = arith.index_cast %4 : i32 to index
    %8 = vector.load %arg5[%c0_1, %7] : memref<1x128xf32, #tpu.memory_space<vmem>>, vector<1x128xf32>
    %c0_2 = arith.constant 0 : index
    %c0_3 = arith.constant 0 : index
    %9 = vector.load %arg2[%c0_2, %c0_3] : memref<8x128xf32, #tpu.memory_space<vmem>>, vector<8x128xf32>
    %c0_4 = arith.constant 0 : index
    %c0_5 = arith.constant 0 : index
    %10 = vector.load %arg3[%c0_4, %c0_5] : memref<128x128xf32, #tpu.memory_space<vmem>>, vector<128x128xf32>
    %cst = arith.constant dense<0.000000e+00> : vector<8x128xf32>
    %11 = tpu.matmul %9, %10, %cst {dimension_numbers = #tpu.dot_dimension_numbers<[1], [0], [0], [1], [0, 0, 1, 1], [], []>} : vector<8x128xf32>, vector<128x128xf32>, vector<8x128xf32> -> vector<8x128xf32>
    %12 = vector.broadcast %6 : vector<1x128xf32> to vector<8x128xf32>
    %13 = arith.addf %11, %12 : vector<8x128xf32>
    %cst_6 = arith.constant 0.000000e+00 : f32
    %14 = vector.broadcast %cst_6 : f32 to vector<8x128xf32>
    %15 = arith.maximumf %13, %14 : vector<8x128xf32>
    %16 = vector.broadcast %8 : vector<1x128xf32> to vector<8x128xf32>
    %17 = arith.mulf %15, %16 : vector<8x128xf32>
    %c0_7 = arith.constant 0 : index
    %c0_8 = arith.constant 0 : index
    %18 = vector.load %arg7[%c0_7, %c0_8] : memref<8x128xf32, #tpu.memory_space<vmem>>, vector<8x128xf32>
    %19 = arith.addf %18, %17 : vector<8x128xf32>
    %c0_9 = arith.constant 0 : index
    %c0_10 = arith.constant 0 : index
    %20 = vector.load %arg7[%c0_9, %c0_10] : memref<8x128xf32, #tpu.memory_space<vmem>>, vector<8x128xf32>
    tpu.vector_store %arg7[%c0_9, %c0_10], %19 {strides = array<i32>} : memref<8x128xf32, #tpu.memory_space<vmem>>, vector<8x128xf32>,
    %c0_i32_11 = arith.constant 0 : i32
    %21 = arith.cmpi eq, %arg1, %c0_i32_11 : i32
    %22 = arith.extui %21 : i1 to i32
    %c0_i32_12 = arith.constant 0 : i32
    %23 = arith.cmpi ne, %22, %c0_i32_12 : i32
    scf.if %23 {
      %c0_13 = arith.constant 0 : index
      %c0_14 = arith.constant 0 : index
      %24 = vector.load %arg7[%c0_13, %c0_14] : memref<8x128xf32, #tpu.memory_space<vmem>>, vector<8x128xf32>
      %cst_15 = arith.constant dense<0.000000e+00> : vector<8xf32>
      %25 = vector.multi_reduction <add>, %24, %cst_15 [1] : vector<8x128xf32> to vector<8xf32>
      %26 = vector.shape_cast %25 : vector<8xf32> to vector<8x1xf32>
      %27 = vector.shape_cast %26 : vector<8x1xf32> to vector<8x1xf32>
      %28 = vector.broadcast %27 : vector<8x1xf32> to vector<8x128xf32>
      %c0_16 = arith.constant 0 : index
      %c0_17 = arith.constant 0 : index
      %29 = vector.load %arg6[%c0_16, %c0_17] : memref<8x128xf32, #tpu.memory_space<vmem>>, vector<8x128xf32>
      tpu.vector_store %arg6[%c0_16, %c0_17], %28 {strides = array<i32>} : memref<8x128xf32, #tpu.memory_space<vmem>>, vector<8x128xf32>,
    } else {
    }
    return
  }
  func.func @transform_0(%arg0: i32, %arg1: i32) -> (i32, i32) {
    %c0_i32 = arith.constant 0 : i32
    %c0_i32_0 = arith.constant 0 : i32
    return %arg0, %c0_i32 : i32, i32
  }
  func.func @transform_1(%arg0: i32, %arg1: i32) -> (i32, i32) {
    %c0_i32 = arith.constant 0 : i32
    %c0_i32_0 = arith.constant 0 : i32
    return %c0_i32, %arg1 : i32, i32
  }
  func.func @transform_2(%arg0: i32, %arg1: i32) -> (i32, i32) {
    %c0_i32 = arith.constant 0 : i32
    %c0_i32_0 = arith.constant 0 : i32
    %c0_i32_1 = arith.constant 0 : i32
    return %c0_i32, %c0_i32_0 : i32, i32
  }
  func.func @transform_3(%arg0: i32, %arg1: i32) -> (i32, i32) {
    %c0_i32 = arith.constant 0 : i32
    %c0_i32_0 = arith.constant 0 : i32
    %c0_i32_1 = arith.constant 0 : i32
    return %c0_i32, %c0_i32_0 : i32, i32
  }
  func.func @transform_4(%arg0: i32, %arg1: i32) -> (i32, i32) {
    %c0_i32 = arith.constant 0 : i32
    %c0_i32_0 = arith.constant 0 : i32
    return %arg0, %c0_i32 : i32, i32
  }
}

</mosaic_0001>

<bundles_post_ra>
// kernel: tpu_custom_call.1
= control target key start
LH: loop header
LB: loop body
LE: loop exit
PB: predicated region body
PF: predicated region fallthrough
CT: control target
= control target key end

     0   :  { %9 = vsyncpa [#allocation4], 0  ;;  %s425_s0 = inlined_call_operand.hbm [shape: f32[8,128], index: 0, kind: input, shape index: {}]   ;;  %s426_s1 = inlined_call_operand.hbm [shape: f32[128,128], index: 1, kind: input, shape index: {}]   ;;  %s427_s2 = inlined_call_operand.vmem [shape: f32[1,128], index: 2, kind: input, shape index: {}]   ;;  %s428_s3 = inlined_call_operand.vmem [shape: f32[1,128], index: 3, kind: input, shape index: {}]   ;;  %s429_s4 = inlined_call_operand.hbm [shape: f32[8,128], index: 4, kind: output, shape index: {}]  }
   0x1   :  { %10 = vsyncpa [#allocation7], 0 }
   0x2   :  { %11 = vsyncpa [#allocation5], 0  ;;  %s343_s15 = smov [#allocation3]   ;;  %s344_s17 = smov [#allocation6]  }
   0x3   :  { %s18_s16 = sshll.u32 %s343_s15, 4  ;;  %s27_s18 = sshll.u32 %s344_s17, 4  ;;  %s19_s16 = int_to_ptr.vmem [resolvable:$true] %s18_s16  ;;  %s376_s18 = int_to_ptr.vmem [resolvable:$true] %s27_s18 }
   0x4   :  { %s271_s21 = scalar_lea.hbm %s425_s0, 128 }
   0x5   :  { %p272_p0 = scmp.ne.s32.totalorder %s425_s0, %s271_s21  ;;  %p275_p1 = scmp.lt.u32.totalorder %s271_s21, %s425_s0 }
   0x7   :  { %p277_p2 = pnand %p275_p1, %p272_p0 }
   0x9   :  { %280 = shalt.err (!%p277_p2)
}
   0xa   :  { %s281_s26 = scalar_lea.vmem %s19_s16, 128  ;;  %p286_p4 = scmp.lt.s32.totalorder %s19_s16, %s19_s16 }
   0xb   :  { %p282_p3 = scmp.ne.s32.totalorder %s19_s16, %s281_s26  ;;  %p287_p5 = scmp.lt.s32.totalorder %s281_s26, %s281_s26 }
   0xd   :  { %p288_p6 = por %p287_p5, %p286_p4 }
   0xf   :  { %p289_p7 = pnand %p288_p6, %p282_p3 }
  0x11   :  { %292 = shalt.err (!%p289_p7)
}
  0x12   :  { %21 = dma.hbm_to_vmem [thread:$0]  %s425_s0, 128, %s19_s16, [#allocation4]  }
  0x13   :  { %s293_s5 = scalar_lea.hbm %s426_s1, 2048 }
  0x14   :  { %p294_p8 = scmp.ne.s32.totalorder %s426_s1, %s293_s5  ;;  %p297_p9 = scmp.lt.u32.totalorder %s293_s5, %s426_s1 }
  0x16   :  { %p299_p10 = pnand %p297_p9, %p294_p8 }
  0x18   :  { %302 = shalt.err (!%p299_p10)
}
  0x19   :  { %s303_s10 = scalar_lea.vmem %s376_s18, 2048  ;;  %p308_p12 = scmp.lt.s32.totalorder %s376_s18, %s376_s18 }
  0x1a   :  { %p304_p11 = scmp.ne.s32.totalorder %s376_s18, %s303_s10  ;;  %p309_p13 = scmp.lt.s32.totalorder %s303_s10, %s303_s10 }
  0x1c   :  { %p310_p0 = por %p309_p13, %p308_p12 }
  0x1e   :  { %p311_p1 = pnand %p310_p0, %p304_p11 }
  0x20   :  { %314 = shalt.err (!%p311_p1)
}
  0x21   :  { %s345_s0 = smov 128   ;;  %s346_s11 = smov 8  }
  0x22   :  { %33 = dma.hbm_to_vmem [thread:$0]  %s426_s1, 2048, %s376_s18, [#allocation7], %s345_s0, %s345_s0, %s346_s11  }
  0x23   :  { %337 = dma.done.wait [#allocation4], 128  }
  0x24   :  { %338 = vsyncadd [#allocation4], 4294967168 }
  0x25   :  { %339 = dma.done.wait [#allocation7], 2048  }
  0x26   :  { %340 = vsyncadd [#allocation7], 4294965248  ;;  %v347_v0 = vmov 0.0|0.0   ;;  %vm348_vm0 = vmmov 0   ;;  %v349_v1 = vmov 0.0   ;;  %v57_v2 = vld [vmem:[#allocation6] sm:$0xff] }
  0x27   :  { %239 = vmatprep.subr.bf16.mxu0 %v347_v0  ;;  %236 = vmatprep.mubr.msk.f32.mxu0 %vm348_vm0, %v349_v1  ;;  %v58_v3 = vld [vmem:[#allocation6 + $0x8] sm:$0xff]  ;;  %v59_v4 = vld [vmem:[#allocation6 + $0x10] sm:$0xff]  ;;  %v60_v6 = vld [vmem:[#allocation6 + $0x18] sm:$0xff]  ;;  %s350_s17 = smov [#allocation8]  }
  0x28   :  { %v240_v5 = vpack.c.bf16 %v58_v3, %v57_v2  ;;  %v243_v7 = vpack.c.bf16 %v60_v6, %v59_v4  ;;  %v61_v8 = vld [vmem:[#allocation6 + $0x20] sm:$0xff]  ;;  %v62_v9 = vld [vmem:[#allocation6 + $0x28] sm:$0xff]  ;;  %v63_v11 = vld [vmem:[#allocation6 + $0x30] sm:$0xff]  ;;  %s173_s18 = sshll.u32 %s350_s17, 4  ;;  %s174_s18 = int_to_ptr.vmem [resolvable:$true] %s173_s18 }
  0x29   :  { %v246_v10 = vpack.c.bf16 %v62_v9, %v61_v8  ;;  %v64_v12 = vld [vmem:[#allocation6 + $0x38] sm:$0xff]  ;;  %v65_v14 = vld [vmem:[#allocation6 + $0x40] sm:$0xff]  ;;  %v66_v15 = vld [vmem:[#allocation6 + $0x48] sm:$0xff]  ;;  %s315_s19 = scalar_lea.vmem %s174_s18, 128  ;;  %p320_p3 = scmp.lt.s32.totalorder %s174_s18, %s174_s18 }
  0x2a   :  { %241 = vmatpush3.bf16.msra.mxu0 %v240_v5  ;;  %v249_v13 = vpack.c.bf16 %v64_v12, %v63_v11  ;;  %v252_v16 = vpack.c.bf16 %v66_v15, %v65_v14  ;;  %v67_v17 = vld [vmem:[#allocation6 + $0x50] sm:$0xff]  ;;  %v68_v18 = vld [vmem:[#allocation6 + $0x58] sm:$0xff]  ;;  %v69_v20 = vld [vmem:[#allocation6 + $0x60] sm:$0xff]  ;;  %p316_p2 = scmp.ne.s32.totalorder %s174_s18, %s315_s19  ;;  %p321_p4 = scmp.lt.s32.totalorder %s315_s19, %s315_s19 }
  0x2b   :  { %242 = vmatprep.subr.bf16.mxu0 %v347_v0  ;;  %v255_v19 = vpack.c.bf16 %v68_v18, %v67_v17  ;;  %v70_v21 = vld [vmem:[#allocation6 + $0x68] sm:$0xff]  ;;  %v71_v23 = vld [vmem:[#allocation6 + $0x70] sm:$0xff]  ;;  %v72_v24 = vld [vmem:[#allocation6 + $0x78] sm:$0xff] }
  0x2c   :  { %v258_v22 = vpack.c.bf16 %v70_v21, %v69_v20  ;;  %v261_v25 = vpack.c.bf16 %v72_v24, %v71_v23  ;;  %v56_v26 = vld [vmem:[#allocation3] sm:$0xff]  ;;  %p322_p5 = por %p321_p4, %p320_p3 }
  0x2d   :  { %v185_v27 = vld [vmem:[%s427_s2] ss:$0 sm:$0xff] }
  0x2e   :  { %244 = vmatpush3.bf16.msra.mxu0 %v243_v7  ;;  %v186_v31 = vld [vmem:[%s428_s3] ss:$0 sm:$0xff]  ;;  %p323_p6 = pnand %p322_p5, %p316_p2 }
  0x2f   :  { %245 = vmatprep.subr.bf16.mxu0 %v347_v0 }
  0x32   :  { %247 = vmatpush3.bf16.msra.mxu0 %v246_v10 }
  0x33   :  { %248 = vmatprep.subr.bf16.mxu0 %v347_v0 }
  0x36   :  { %250 = vmatpush3.bf16.msra.mxu0 %v249_v13 }
  0x37   :  { %251 = vmatprep.subr.bf16.mxu0 %v347_v0 }
  0x3a   :  { %253 = vmatpush3.bf16.msra.mxu0 %v252_v16 }
  0x3b   :  { %254 = vmatprep.subr.bf16.mxu0 %v347_v0 }
  0x3e   :  { %256 = vmatpush3.bf16.msra.mxu0 %v255_v19 }
  0x3f   :  { %257 = vmatprep.subr.bf16.mxu0 %v347_v0 }
  0x42   :  { %259 = vmatpush3.bf16.msra.mxu0 %v258_v22 }
  0x43   :  { %260 = vmatprep.subr.bf16.mxu0 %v347_v0 }
  0x46   :  { %262 = vmatpush3.bf16.msra.mxu0 %v261_v25 }
  0x49   :  { %237 = vmatmul.mubr.f32.vlgmr.msra.gmra.mrb[0].mxu0 %v56_v26 }
 0x11c   :  { %v145_v28 = vpop.f32.mrb[0].mxu0 }
 0x11d   :  { %v146_v29 = vadd.f32 %v185_v27, %v145_v28  ;;  %v238_v30 = vpop.f32.mrb[1].mxu0 }
 0x11f   :  { %v149_v32 = vmax.f32 %v146_v29, 0.0 }
 0x121   :  { %v156_v33 = vmul.f32 %v186_v31, %v149_v32 }
 0x123   :  { %164 = vadd.xlane.f32.xlu0 %v156_v33 }
 0x1b0   :  { %v165_v34 = vpop.xlane.xlu0 %164 }
 0x1b1   :  { %166 = vst [vmem:[#allocation8] sm:$0xff] %v165_v34 }
 0x1b2   :  { %326 = shalt.err (!%p323_p6)
}
 0x1b3   :  { %s327_s21 = scalar_lea.hbm %s429_s4, 128 }
 0x1b4   :  { %p328_p7 = scmp.ne.s32.totalorder %s429_s4, %s327_s21  ;;  %p331_p8 = scmp.lt.u32.totalorder %s327_s21, %s429_s4 }
 0x1b6   :  { %p333_p9 = pnand %p331_p8, %p328_p7 }
 0x1b8   :  { %336 = shalt.err (!%p333_p9)
}
 0x1b9   :  { %176 = dma.vmem_to_hbm [thread:$0]  %s174_s18, 128, %s429_s4, [#allocation5]  }
 0x1ba   :  { %341 = dma.done.wait [#allocation5], 128  }
 0x1bb   :  { %342 = vsyncadd [#allocation5], 4294967168 }
 0x1bc   :  { %180 = vsyncpa [#allocation4], 1 }
 0x1bd   :  { %181 = vsyncpa [#allocation7], 1 }
 0x1be   :  { %182 = vsyncpa [#allocation5], 1 }

</bundles_post_ra>
